<compile_context>
chip_gen: v7x
topology: tpu7x:2x2x1
jax: 0.10.0
libtpu: 0.0.40
codegen_flags: <defaults>
</compile_context>

<pallas_src>
import functools

import jax
import jax.numpy as jnp
from jax import lax
from jax.experimental import pallas as pl
from jax.experimental.pallas import tpu as pltpu


def _compounded_loss_kernel(logits_ref, targets_ref,
                            ce_ref, focal_ref, inter_ref, psum_ref, tsum_ref,
                            *, gamma, chunk, n_chunks):
    j = pl.program_id(2)  # pixel-tile (reduction) axis

    # Narrow accumulators (width = one chunk) are resident output blocks across
    # the reduction axis -> zero them at the start of every (batch, super-tile)
    # sweep; they are written back to HBM only when that slice finishes.
    @pl.when(j == 0)
    def _():
        ce_ref[...] = jnp.zeros_like(ce_ref)
        focal_ref[...] = jnp.zeros_like(focal_ref)
        inter_ref[...] = jnp.zeros_like(inter_ref)
        psum_ref[...] = jnp.zeros_like(psum_ref)
        tsum_ref[...] = jnp.zeros_like(tsum_ref)

    c = logits_ref.shape[1]
    class_iota = lax.broadcasted_iota(jnp.int32, (1, c, 1), 1)  # hoisted, tiny

    def chunk_body(k, carry):
        start = k * chunk
        if not isinstance(start, int) and chunk % 128 == 0:
            start = pl.multiple_of(start, 128)
        logits = logits_ref[:, :, pl.ds(start, chunk)].astype(jnp.float32)  # (1,C,CK)
        tgt = targets_ref[:, :, pl.ds(start, chunk)]                         # (1,1,CK)

        # In-kernel one-hot (out-of-range labels -> all-zero column, like one_hot).
        t = (class_iota == tgt).astype(jnp.float32)                          # (1,C,CK)

        # Numerically stable softmax / log-softmax over the (small) class axis.
        m = jnp.max(logits, axis=1, keepdims=True)                           # (1,1,CK)
        shifted = logits - m
        e = jnp.exp(shifted)
        s = jnp.sum(e, axis=1, keepdims=True)                                # (1,1,CK)
        inv_s = pl.reciprocal(s, approx=False)   # exact: approx would perturb tol
        p = e * inv_s                                                        # (1,C,CK)
        logp = shifted - jnp.log(s)

        ce_contrib = -jnp.sum(t * logp, axis=1, keepdims=True)               # (1,1,CK)

        # Focal from per-pixel CE (one-hot targets): p_t = exp(-ce),
        # focal = (1 - p_t)^gamma * ce.  Avoid float pow for small int gamma.
        p_t = jnp.exp(-ce_contrib)
        q = 1.0 - p_t
        if gamma == 2.0:
            fw = q * q
        elif gamma == 1.0:
            fw = q
        elif float(gamma).is_integer() and 2.0 < gamma <= 4.0:
            fw = q
            for _ in range(int(gamma) - 1):
                fw = fw * q
        else:
            fw = q ** gamma
        focal_contrib = fw * ce_contrib                                      # (1,1,CK)

        # Narrow accumulator updates (pure VPU adds, chunk-wide only).
        ce_ref[...] += ce_contrib
        focal_ref[...] += focal_contrib
        inter_ref[...] += p * t
        psum_ref[...] += p
        tsum_ref[...] += t
        return carry

    if n_chunks <= 8:
        for k in range(n_chunks):          # short fixed loop -> fully static
            chunk_body(k, 0)
    else:
        lax.fori_loop(0, n_chunks, chunk_body, 0, unroll=8)


def _pick_lane_tile(hw, c, itemsize, target_bytes=2 << 20, max_lanes=65536):
    """Largest lane tile that (a) divides H*W and (b) keeps the logits block
    near `target_bytes` so each grid step amortizes the ~0.35us step overhead."""
    if hw <= 256:
        return hw
    desired = max(128, min(max_lanes, target_bytes // max(1, c * itemsize)))
    desired = (desired // 128) * 128
    cand = min(desired, (hw // 128) * 128)
    while cand >= 128:
        if hw % cand == 0:
            return cand
        cand -= 128
    # TODO(synk): pad-and-mask tail tiles when H*W has no multiple-of-128
    # divisor (padded pixels must be masked out of psum for the Dice denom).
    return hw


def _pick_chunk(tl, max_chunk=512):
    """Largest multiple-of-128 chunk <= max_chunk that divides the lane tile."""
    if tl <= max_chunk:
        return tl
    cand = max_chunk
    while cand >= 128:
        if tl % cand == 0 and cand % 128 == 0:
            return cand
        cand -= 128
    return tl


def compounded_loss(logits_nchw, targets, *, weights=(1, 1, 1), gamma=2.0,
                    smooth=1e-5, tile_lanes=None, pixel_splits=None):
    """CompoundedLoss.forward: w_ce*CE + w_dice*Dice + w_focal*Focal (scalar)."""
    N, C, H, W = logits_nchw.shape
    HW = H * W
    P = N * HW

    itemsize = jnp.dtype(logits_nchw.dtype).itemsize
    TL = tile_lanes if tile_lanes is not None else _pick_lane_tile(HW, C, itemsize)
    if HW % TL:
        raise ValueError(f"tile_lanes={TL} must divide H*W={HW}")
    J_total = HW // TL

    if pixel_splits is None:
        # Feed both v7x TensorCores when the batch axis alone cannot.
        S = 2 if (N == 1 and J_total >= 2 and J_total % 2 == 0) else 1
    else:
        S = int(pixel_splits)
        if J_total % S:
            raise ValueError(f"pixel_splits={S} must divide H*W/TL={J_total}")
    J = J_total // S
    NS = N * S

    CHUNK = _pick_chunk(TL)
    n_chunks = TL // CHUNK

    # Free reshapes only -- no transpose, no materialized one-hot.  bf16 logits
    # and int8 targets (emitted upstream) pass straight through; the kernel
    # upcasts per-chunk.
    x = logits_nchw.reshape(N, C, HW)
    tgt = targets.reshape(N, 1, HW)
    if tgt.dtype != jnp.int32:
        tgt = tgt.astype(jnp.int32)  # prefer emitting int32/int8 upstream

    kernel = functools.partial(_compounded_loss_kernel, gamma=float(gamma),
                               chunk=CHUNK, n_chunks=n_chunks)

    out_shape = (
        jax.ShapeDtypeStruct((NS, 1, CHUNK), jnp.float32),   # CE partials
        jax.ShapeDtypeStruct((NS, 1, CHUNK), jnp.float32),   # Focal partials
        jax.ShapeDtypeStruct((NS, C, CHUNK), jnp.float32),   # dice intersection
        jax.ShapeDtypeStruct((NS, C, CHUNK), jnp.float32),   # dice pred-sum
        jax.ShapeDtypeStruct((NS, C, CHUNK), jnp.float32),   # dice target-sum
    )
    narrow_map = lambda i, s, j: (i * S + s, 0, 0)
    out_specs = (
        pl.BlockSpec((1, 1, CHUNK), narrow_map),
        pl.BlockSpec((1, 1, CHUNK), narrow_map),
        pl.BlockSpec((1, C, CHUNK), narrow_map),
        pl.BlockSpec((1, C, CHUNK), narrow_map),
        pl.BlockSpec((1, C, CHUNK), narrow_map),
    )
    in_specs = [
        pl.BlockSpec((1, C, TL), lambda i, s, j: (i, 0, s * J + j)),
        pl.BlockSpec((1, 1, TL), lambda i, s, j: (i, 0, s * J + j)),
    ]

    # VMEM budget: double-buffered inputs + tiny double-buffered outputs + slack.
    in_block_bytes = C * TL * itemsize + TL * tgt.dtype.itemsize
    out_block_bytes = (2 * 1 + 3 * C) * CHUNK * 4
    vmem_limit = int(min(max(2 * in_block_bytes + 2 * out_block_bytes + (8 << 20),
                             16 << 20),
                         48 << 20))

    cost = pl.CostEstimate(
        flops=int(15 * C * P),
        transcendentals=int((C + 2) * P),
        bytes_accessed=int(itemsize * C * P + tgt.dtype.itemsize * P
                           + 4 * NS * (2 + 3 * C) * CHUNK),
    )

    ce_p, focal_p, inter_p, psum_p, tsum_p = pl.pallas_call(
        kernel,
        out_shape=out_shape,
        grid_spec=pltpu.PrefetchScalarGridSpec(
            num_scalar_prefetch=0,
            grid=(N, S, J),
            in_specs=in_specs,
            out_specs=out_specs,
        ),
        compiler_params=pltpu.CompilerParams(
            dimension_semantics=("parallel", "parallel", "arbitrary"),
            vmem_limit_bytes=vmem_limit),
        cost_estimate=cost,
    )(x, tgt)

    # Tiny final combine (a few KB of narrow partials) in plain JAX.
    w_ce, w_dice, w_focal = (float(w) for w in weights)
    n = jnp.float32(P)
    ce = jnp.sum(ce_p) / n
    focal = jnp.sum(focal_p) / n
    inter = jnp.sum(inter_p, axis=(0, 2))
    psum = jnp.sum(psum_p, axis=(0, 2))
    tsum = jnp.sum(tsum_p, axis=(0, 2))
    dice = jnp.mean(1.0 - (2.0 * inter + smooth) / (psum + tsum + smooth))
    return w_ce * ce + w_dice * dice + w_focal * focal


def _reference_loss(logits_nchw, targets, weights=(1, 1, 1), gamma=2.0,
                    smooth=1e-5):
    """Pure-JAX reference mirroring the PyTorch CompoundedLoss semantics."""
    N, C, H, W = logits_nchw.shape
    x = jnp.transpose(logits_nchw, (0, 2, 3, 1)).reshape(-1, C).astype(jnp.float32)
    t = jax.nn.one_hot(targets.reshape(-1), C, dtype=jnp.float32)
    logp = jax.nn.log_softmax(x, axis=-1)
    p = jnp.exp(logp)
    ce = jnp.mean(-jnp.sum(t * logp, axis=-1))
    focal = jnp.mean(-jnp.sum(t * ((1.0 - p) ** gamma) * logp, axis=-1))
    inter = jnp.sum(p * t, axis=0)
    dice = jnp.mean(1.0 - (2.0 * inter + smooth) /
                    (jnp.sum(p, axis=0) + jnp.sum(t, axis=0) + smooth))
    w_ce, w_dice, w_focal = weights
    return w_ce * ce + w_dice * dice + w_focal * focal


if __name__ == "__main__":
    # TODO(synk): BoundaryLoss / TverskyLoss / DiceCE / DiceFocal branches of the
    # cfg dispatch (and the dist_maps input) are not part of the chosen
    # deterministic config.
    key = jax.random.PRNGKey(0)
    k1, k2 = jax.random.split(key)
    N, C, H, W = 2, 4, 16, 16
    logits = jax.random.normal(k1, (N, C, H, W), dtype=jnp.float32)
    targets = jax.random.randint(k2, (N, H, W), 0, C, dtype=jnp.int32)

    loss = compounded_loss(logits, targets)
    loss = jax.block_until_ready(loss)

    ref = _reference_loss(logits, targets)
    assert jnp.allclose(loss, ref, rtol=1e-4, atol=1e-5), (loss, ref)
    print("KERNEL_OK")
</pallas_src>

<mosaic_0001>
module attributes {stable_mosaic.version = 11 : i64} {
  func.func @_compounded_loss_kernel(%arg0: i32, %arg1: i32, %arg2: i32, %arg3: memref<1x4x256xf32, #tpu.memory_space<vmem>>, %arg4: memref<1x1x256xi32, #tpu.memory_space<vmem>>, %arg5: memref<1x1x256xf32, #tpu.memory_space<vmem>>, %arg6: memref<1x1x256xf32, #tpu.memory_space<vmem>>, %arg7: memref<1x4x256xf32, #tpu.memory_space<vmem>>, %arg8: memref<1x4x256xf32, #tpu.memory_space<vmem>>, %arg9: memref<1x4x256xf32, #tpu.memory_space<vmem>>) attributes {dimension_semantics = [#tpu.dimension_semantics<parallel>, #tpu.dimension_semantics<parallel>, #tpu.dimension_semantics<arbitrary>], iteration_bounds = array<i64: 2, 1, 1>, scalar_prefetch = 0 : i64, scratch_operands = 0 : i64, tpu.core_type = #tpu.core_type<tc>, window_params = [{transform_indices = @transform_0, window_bounds = array<i64: 1, 4, 256>}, {transform_indices = @transform_1, window_bounds = array<i64: 1, 1, 256>}, {transform_indices = @transform_2, window_bounds = array<i64: 1, 1, 256>}, {transform_indices = @transform_3, window_bounds = array<i64: 1, 1, 256>}, {transform_indices = @transform_4, window_bounds = array<i64: 1, 4, 256>}, {transform_indices = @transform_5, window_bounds = array<i64: 1, 4, 256>}, {transform_indices = @transform_6, window_bounds = array<i64: 1, 4, 256>}]} {
    %c0_i32 = arith.constant 0 : i32
    %0 = arith.cmpi eq, %arg2, %c0_i32 : i32
    %1 = arith.extui %0 : i1 to i32
    %c0_i32_0 = arith.constant 0 : i32
    %2 = arith.cmpi ne, %1, %c0_i32_0 : i32
    scf.if %2 {
      %cst_41 = arith.constant 0.000000e+00 : f32
      %52 = vector.broadcast %cst_41 : f32 to vector<1x1x256xf32>
      %c0_42 = arith.constant 0 : index
      %c0_43 = arith.constant 0 : index
      %c0_44 = arith.constant 0 : index
      %53 = vector.load %arg5[%c0_42, %c0_43, %c0_44] : memref<1x1x256xf32, #tpu.memory_space<vmem>>, vector<1x1x256xf32>
      tpu.vector_store %arg5[%c0_42, %c0_43, %c0_44], %52 {strides = array<i32>} : memref<1x1x256xf32, #tpu.memory_space<vmem>>, vector<1x1x256xf32>,
      %cst_45 = arith.constant 0.000000e+00 : f32
      %54 = vector.broadcast %cst_45 : f32 to vector<1x1x256xf32>
      %c0_46 = arith.constant 0 : index
      %c0_47 = arith.constant 0 : index
      %c0_48 = arith.constant 0 : index
      %55 = vector.load %arg6[%c0_46, %c0_47, %c0_48] : memref<1x1x256xf32, #tpu.memory_space<vmem>>, vector<1x1x256xf32>
      tpu.vector_store %arg6[%c0_46, %c0_47, %c0_48], %54 {strides = array<i32>} : memref<1x1x256xf32, #tpu.memory_space<vmem>>, vector<1x1x256xf32>,
      %cst_49 = arith.constant 0.000000e+00 : f32
      %56 = vector.broadcast %cst_49 : f32 to vector<1x4x256xf32>
      %c0_50 = arith.constant 0 : index
      %c0_51 = arith.constant 0 : index
      %c0_52 = arith.constant 0 : index
      %57 = vector.load %arg7[%c0_50, %c0_51, %c0_52] : memref<1x4x256xf32, #tpu.memory_space<vmem>>, vector<1x4x256xf32>
      tpu.vector_store %arg7[%c0_50, %c0_51, %c0_52], %56 {strides = array<i32>} : memref<1x4x256xf32, #tpu.memory_space<vmem>>, vector<1x4x256xf32>,
      %cst_53 = arith.constant 0.000000e+00 : f32
      %58 = vector.broadcast %cst_53 : f32 to vector<1x4x256xf32>
      %c0_54 = arith.constant 0 : index
      %c0_55 = arith.constant 0 : index
      %c0_56 = arith.constant 0 : index
      %59 = vector.load %arg8[%c0_54, %c0_55, %c0_56] : memref<1x4x256xf32, #tpu.memory_space<vmem>>, vector<1x4x256xf32>
      tpu.vector_store %arg8[%c0_54, %c0_55, %c0_56], %58 {strides = array<i32>} : memref<1x4x256xf32, #tpu.memory_space<vmem>>, vector<1x4x256xf32>,
      %cst_57 = arith.constant 0.000000e+00 : f32
      %60 = vector.broadcast %cst_57 : f32 to vector<1x4x256xf32>
      %c0_58 = arith.constant 0 : index
      %c0_59 = arith.constant 0 : index
      %c0_60 = arith.constant 0 : index
      %61 = vector.load %arg9[%c0_58, %c0_59, %c0_60] : memref<1x4x256xf32, #tpu.memory_space<vmem>>, vector<1x4x256xf32>
      tpu.vector_store %arg9[%c0_58, %c0_59, %c0_60], %60 {strides = array<i32>} : memref<1x4x256xf32, #tpu.memory_space<vmem>>, vector<1x4x256xf32>,
    } else {
    }
    %3 = tpu.iota {dimensions = array<i32: 1>} : vector<1x4x1xi32>
    %c0 = arith.constant 0 : index
    %c0_1 = arith.constant 0 : index
    %c0_2 = arith.constant 0 : index
    %4 = vector.load %arg3[%c0, %c0_1, %c0_2] : memref<1x4x256xf32, #tpu.memory_space<vmem>>, vector<1x4x256xf32>
    %c0_3 = arith.constant 0 : index
    %c0_4 = arith.constant 0 : index
    %c0_5 = arith.constant 0 : index
    %5 = vector.load %arg4[%c0_3, %c0_4, %c0_5] : memref<1x1x256xi32, #tpu.memory_space<vmem>>, vector<1x1x256xi32>
    %6 = vector.broadcast %3 : vector<1x4x1xi32> to vector<1x4x256xi32>
    %7 = vector.broadcast %5 : vector<1x1x256xi32> to vector<1x4x256xi32>
    %8 = arith.cmpi eq, %6, %7 : vector<1x4x256xi32>
    %9 = arith.extui %8 : vector<1x4x256xi1> to vector<1x4x256xi32>
    %10 = arith.sitofp %9 : vector<1x4x256xi32> to vector<1x4x256xf32>
    %cst = arith.constant dense<0xFF800000> : vector<1x256xf32>
    %11 = vector.multi_reduction <maximumf>, %4, %cst [1] : vector<1x4x256xf32> to vector<1x256xf32>
    %12 = vector.shape_cast %11 : vector<1x256xf32> to vector<1x1x256xf32>
    %13 = vector.broadcast %12 : vector<1x1x256xf32> to vector<1x4x256xf32>
    %14 = arith.subf %4, %13 : vector<1x4x256xf32>
    %15 = math.exp %14 : vector<1x4x256xf32>
    %cst_6 = arith.constant dense<0.000000e+00> : vector<1x256xf32>
    %16 = vector.multi_reduction <add>, %15, %cst_6 [1] : vector<1x4x256xf32> to vector<1x256xf32>
    %17 = vector.shape_cast %16 : vector<1x256xf32> to vector<1x1x256xf32>
    %18 = tpu.reciprocal %17 : vector<1x1x256xf32> -> vector<1x1x256xf32>
    %19 = vector.broadcast %18 : vector<1x1x256xf32> to vector<1x4x256xf32>
    %20 = arith.mulf %15, %19 : vector<1x4x256xf32>
    %21 = math.log %17 : vector<1x1x256xf32>
    %22 = vector.broadcast %21 : vector<1x1x256xf32> to vector<1x4x256xf32>
    %23 = arith.subf %14, %22 : vector<1x4x256xf32>
    %24 = arith.mulf %10, %23 : vector<1x4x256xf32>
    %cst_7 = arith.constant dense<0.000000e+00> : vector<1x256xf32>
    %25 = vector.multi_reduction <add>, %24, %cst_7 [1] : vector<1x4x256xf32> to vector<1x256xf32>
    %26 = vector.shape_cast %25 : vector<1x256xf32> to vector<1x1x256xf32>
    %cst_8 = arith.constant 0.000000e+00 : f32
    %27 = vector.broadcast %cst_8 : f32 to vector<1x1x256xf32>
    %28 = arith.subf %27, %26 : vector<1x1x256xf32>
    %cst_9 = arith.constant 0.000000e+00 : f32
    %29 = vector.broadcast %cst_9 : f32 to vector<1x1x256xf32>
    %30 = arith.subf %29, %28 : vector<1x1x256xf32>
    %31 = math.exp %30 : vector<1x1x256xf32>
    %cst_10 = arith.constant 1.000000e+00 : f32
    %32 = vector.broadcast %cst_10 : f32 to vector<1x1x256xf32>
    %33 = arith.subf %32, %31 : vector<1x1x256xf32>
    %34 = arith.mulf %33, %33 : vector<1x1x256xf32>
    %35 = arith.mulf %34, %28 : vector<1x1x256xf32>
    %c0_11 = arith.constant 0 : index
    %c0_12 = arith.constant 0 : index
    %c0_13 = arith.constant 0 : index
    %36 = vector.load %arg5[%c0_11, %c0_12, %c0_13] : memref<1x1x256xf32, #tpu.memory_space<vmem>>, vector<1x1x256xf32>
    %37 = arith.addf %36, %28 : vector<1x1x256xf32>
    %c0_14 = arith.constant 0 : index
    %c0_15 = arith.constant 0 : index
    %c0_16 = arith.constant 0 : index
    %38 = vector.load %arg5[%c0_14, %c0_15, %c0_16] : memref<1x1x256xf32, #tpu.memory_space<vmem>>, vector<1x1x256xf32>
    tpu.vector_store %arg5[%c0_14, %c0_15, %c0_16], %37 {strides = array<i32>} : memref<1x1x256xf32, #tpu.memory_space<vmem>>, vector<1x1x256xf32>,
    %c0_17 = arith.constant 0 : index
    %c0_18 = arith.constant 0 : index
    %c0_19 = arith.constant 0 : index
    %39 = vector.load %arg6[%c0_17, %c0_18, %c0_19] : memref<1x1x256xf32, #tpu.memory_space<vmem>>, vector<1x1x256xf32>
    %40 = arith.addf %39, %35 : vector<1x1x256xf32>
    %c0_20 = arith.constant 0 : index
    %c0_21 = arith.constant 0 : index
    %c0_22 = arith.constant 0 : index
    %41 = vector.load %arg6[%c0_20, %c0_21, %c0_22] : memref<1x1x256xf32, #tpu.memory_space<vmem>>, vector<1x1x256xf32>
    tpu.vector_store %arg6[%c0_20, %c0_21, %c0_22], %40 {strides = array<i32>} : memref<1x1x256xf32, #tpu.memory_space<vmem>>, vector<1x1x256xf32>,
    %c0_23 = arith.constant 0 : index
    %c0_24 = arith.constant 0 : index
    %c0_25 = arith.constant 0 : index
    %42 = vector.load %arg7[%c0_23, %c0_24, %c0_25] : memref<1x4x256xf32, #tpu.memory_space<vmem>>, vector<1x4x256xf32>
    %43 = arith.mulf %20, %10 : vector<1x4x256xf32>
    %44 = arith.addf %42, %43 : vector<1x4x256xf32>
    %c0_26 = arith.constant 0 : index
    %c0_27 = arith.constant 0 : index
    %c0_28 = arith.constant 0 : index
    %45 = vector.load %arg7[%c0_26, %c0_27, %c0_28] : memref<1x4x256xf32, #tpu.memory_space<vmem>>, vector<1x4x256xf32>
    tpu.vector_store %arg7[%c0_26, %c0_27, %c0_28], %44 {strides = array<i32>} : memref<1x4x256xf32, #tpu.memory_space<vmem>>, vector<1x4x256xf32>,
    %c0_29 = arith.constant 0 : index
    %c0_30 = arith.constant 0 : index
    %c0_31 = arith.constant 0 : index
    %46 = vector.load %arg8[%c0_29, %c0_30, %c0_31] : memref<1x4x256xf32, #tpu.memory_space<vmem>>, vector<1x4x256xf32>
    %47 = arith.addf %46, %20 : vector<1x4x256xf32>
    %c0_32 = arith.constant 0 : index
    %c0_33 = arith.constant 0 : index
    %c0_34 = arith.constant 0 : index
    %48 = vector.load %arg8[%c0_32, %c0_33, %c0_34] : memref<1x4x256xf32, #tpu.memory_space<vmem>>, vector<1x4x256xf32>
    tpu.vector_store %arg8[%c0_32, %c0_33, %c0_34], %47 {strides = array<i32>} : memref<1x4x256xf32, #tpu.memory_space<vmem>>, vector<1x4x256xf32>,
    %c0_35 = arith.constant 0 : index
    %c0_36 = arith.constant 0 : index
    %c0_37 = arith.constant 0 : index
    %49 = vector.load %arg9[%c0_35, %c0_36, %c0_37] : memref<1x4x256xf32, #tpu.memory_space<vmem>>, vector<1x4x256xf32>
    %50 = arith.addf %49, %10 : vector<1x4x256xf32>
    %c0_38 = arith.constant 0 : index
    %c0_39 = arith.constant 0 : index
    %c0_40 = arith.constant 0 : index
    %51 = vector.load %arg9[%c0_38, %c0_39, %c0_40] : memref<1x4x256xf32, #tpu.memory_space<vmem>>, vector<1x4x256xf32>
    tpu.vector_store %arg9[%c0_38, %c0_39, %c0_40], %50 {strides = array<i32>} : memref<1x4x256xf32, #tpu.memory_space<vmem>>, vector<1x4x256xf32>,
    return
  }
  func.func @transform_0(%arg0: i32, %arg1: i32, %arg2: i32) -> (i32, i32, i32) {
    %c1_i32 = arith.constant 1 : i32
    %0 = arith.muli %arg1, %c1_i32 : i32
    %1 = arith.addi %0, %arg2 : i32
    %c0_i32 = arith.constant 0 : i32
    %c0_i32_0 = arith.constant 0 : i32
    return %arg0, %c0_i32, %1 : i32, i32, i32
  }
  func.func @transform_1(%arg0: i32, %arg1: i32, %arg2: i32) -> (i32, i32, i32) {
    %c1_i32 = arith.constant 1 : i32
    %0 = arith.muli %arg1, %c1_i32 : i32
    %1 = arith.addi %0, %arg2 : i32
    %c0_i32 = arith.constant 0 : i32
    %c0_i32_0 = arith.constant 0 : i32
    return %arg0, %c0_i32, %1 : i32, i32, i32
  }
  func.func @transform_2(%arg0: i32, %arg1: i32, %arg2: i32) -> (i32, i32, i32) {
    %c1_i32 = arith.constant 1 : i32
    %0 = arith.muli %arg0, %c1_i32 : i32
    %1 = arith.addi %0, %arg1 : i32
    %c0_i32 = arith.constant 0 : i32
    %c0_i32_0 = arith.constant 0 : i32
    %c0_i32_1 = arith.constant 0 : i32
    return %1, %c0_i32, %c0_i32_0 : i32, i32, i32
  }
  func.func @transform_3(%arg0: i32, %arg1: i32, %arg2: i32) -> (i32, i32, i32) {
    %c1_i32 = arith.constant 1 : i32
    %0 = arith.muli %arg0, %c1_i32 : i32
    %1 = arith.addi %0, %arg1 : i32
    %c0_i32 = arith.constant 0 : i32
    %c0_i32_0 = arith.constant 0 : i32
    %c0_i32_1 = arith.constant 0 : i32
    return %1, %c0_i32, %c0_i32_0 : i32, i32, i32
  }
  func.func @transform_4(%arg0: i32, %arg1: i32, %arg2: i32) -> (i32, i32, i32) {
    %c1_i32 = arith.constant 1 : i32
    %0 = arith.muli %arg0, %c1_i32 : i32
    %1 = arith.addi %0, %arg1 : i32
    %c0_i32 = arith.constant 0 : i32
    %c0_i32_0 = arith.constant 0 : i32
    %c0_i32_1 = arith.constant 0 : i32
    return %1, %c0_i32, %c0_i32_0 : i32, i32, i32
  }
  func.func @transform_5(%arg0: i32, %arg1: i32, %arg2: i32) -> (i32, i32, i32) {
    %c1_i32 = arith.constant 1 : i32
    %0 = arith.muli %arg0, %c1_i32 : i32
    %1 = arith.addi %0, %arg1 : i32
    %c0_i32 = arith.constant 0 : i32
    %c0_i32_0 = arith.constant 0 : i32
    %c0_i32_1 = arith.constant 0 : i32
    return %1, %c0_i32, %c0_i32_0 : i32, i32, i32
  }
  func.func @transform_6(%arg0: i32, %arg1: i32, %arg2: i32) -> (i32, i32, i32) {
    %c1_i32 = arith.constant 1 : i32
    %0 = arith.muli %arg0, %c1_i32 : i32
    %1 = arith.addi %0, %arg1 : i32
    %c0_i32 = arith.constant 0 : i32
    %c0_i32_0 = arith.constant 0 : i32
    %c0_i32_1 = arith.constant 0 : i32
    return %1, %c0_i32, %c0_i32_0 : i32, i32, i32
  }
}

</mosaic_0001>

<bundles_post_ra>
// kernel: tpu_custom_call.1
= control target key start
LH: loop header
LB: loop body
LE: loop exit
PB: predicated region body
PF: predicated region fallthrough
CT: control target
= control target key end

     0   :  { %s1779_s0 = inlined_call_operand.hbm [shape: f32[2,4,256], index: 0, kind: input, shape index: {}]   ;;  %s1780_s1 = inlined_call_operand.hbm [shape: s32[2,1,256], index: 1, kind: input, shape index: {}]   ;;  %s1781_s2 = inlined_call_operand.hbm [shape: f32[2,1,256], index: 2, kind: output, shape index: {0}]   ;;  %s1782_s3 = inlined_call_operand.hbm [shape: f32[2,1,256], index: 3, kind: output, shape index: {1}]   ;;  %s1783_s4 = inlined_call_operand.hbm [shape: f32[2,4,256], index: 4, kind: output, shape index: {2}]   ;;  %s1784_s5 = inlined_call_operand.hbm [shape: f32[2,4,256], index: 5, kind: output, shape index: {3}]   ;;  %s1785_s6 = inlined_call_operand.hbm [shape: f32[2,4,256], index: 6, kind: output, shape index: {4}]  }
   0x1   :  { %1792 = sst [smem:[#allocation22_spill]] %s1779_s0 }
   0x2   :  { %1793 = sst [smem:[#allocation23_spill]] %s1780_s1 }
   0x3   :  { %12 = vsyncpa [#allocation3], 0 }
   0x4   :  { %14 = vsyncpa [#allocation3 + $0x1], 0 }
   0x5   :  { %15 = vsyncpa [#allocation6], 0 }
   0x6   :  { %17 = vsyncpa [#allocation6 + $0x1], 0 }
   0x7   :  { %18 = vsyncpa [#allocation4], 0 }
   0x8   :  { %20 = vsyncpa [#allocation4 + $0x1], 0 }
   0x9   :  { %21 = vsyncpa [#allocation9], 0 }
   0xa   :  { %23 = vsyncpa [#allocation9 + $0x1], 0 }
   0xb   :  { %24 = vsyncpa [#allocation12], 0 }
   0xc   :  { %26 = vsyncpa [#allocation12 + $0x1], 0  ;;  %s1370_s21 = smov 0   ;;  %s1372_s22 = smov 0  }
   0xd   :  { %s1374_s23 = smov 0   ;;  %s1376_s24 = smov 0  }
   0xe   :  { %s1378_s25 = smov 0   ;;  %s1380_s26 = smov 0  }
   0xf LB: > { %1794 = sst [smem:[#allocation19_spill]] %s1320_s25  ;;  %s1401_s27 = sadd.s32 4294967295, %s1324_s26   ;;  %s1324_s26 = sphi %s1380_s26, %s32_s26   ;;  %s1320_s25 = sphi %s1378_s25, %s1818_s25   ;;  %s1316_s24 = sphi %s1376_s24, %s1817_s24   ;;  %s1312_s23 = sphi %s1374_s23, %s1821_s23   ;;  %s1308_s22 = sphi %s1372_s22, %s1820_s22   ;;  %s1304_s21 = sphi %s1370_s21, %s1819_s21  }
  0x10   : > { %s1786_s28 = sadd.s32 4294967294, %s1324_s26   ;;  %s51_s29 = sadd.s32 1, %s1320_s25 }
  0x11   : > { %s62_s30 = sadd.s32 1, %s1312_s23  ;;  %p53_p0 = scmp.ge.s32.totalorder %s51_s29, 2 }
  0x12   : > { %p69_p1 = scmp.ne.s32.totalorder %s1312_s23, %s1308_s22  ;;  %p70_p2 = scmp.eq.s32.totalorder %s1324_s26, 0 }
  0x13   : > { %p75_p3 = scmp.ne.s32.totalorder %s1308_s22, %s1304_s21  ;;  %s1823_s29 = smov (%p53_p0, %s51_s29), 0 }
  0x14   : > { %1795 = sst [smem:[#allocation20_spill]] %s1823_s29  ;;  %p1413_p4 = por %p70_p2, %p69_p1 }
  0x15   : > { %p76_p5 = scmp.eq.s32.totalorder %s1401_s27, 0  ;;  %s57_s8 = ssub.s32 %s1320_s25, %s1823_s29 }
  0x16   : > { %p131_p6 = scmp.eq.s32.totalorder %s1401_s27, 1  ;;  %p60_p7 = scmp.eq.s32.totalorder %s57_s8, 0 }
  0x17   : > { %p1421_p8 = por %p76_p5, %p75_p3  ;;  %p137_p10 = scmp.eq.s32.totalorder %s1786_s28, 1 }
  0x18   : > { %p1425_p9 = por %p131_p6, %p69_p1  ;;  %p991_p13 = scmp.lt.s32.totalorder %s1324_s26, 2 }
  0x19   : > { %s1797_s9 = scalar_select %p1421_p8, 1, 0 }
  0x1a   : > { %s1798_s10 = scalar_select %p1425_p9, 1, 0 }
  0x1b   : > { %s1432_s11 = scalar_select %p60_p7, %s1312_s23, %s62_s30  }
  0x1c   : > { %p1434_p11 = por %p137_p10, %p75_p3  ;;  %s1441_s13 = sand.u32 1, %s1312_s23  }
  0x1d   : > { %1799 = sst [smem:[#allocation21_spill]] %s1432_s11  ;;  %s914_s14 = sshll.u32 %s1441_s13, 3 }
  0x1e   : > { %s1800_s12 = scalar_select %p1434_p11, 1, 0 }
  0x1f   : > { %s947_s15 = sshll.u32 %s1320_s25, 7  ;;  %s1801_s0 = sld [smem:[#allocation22_spill]] }
  0x20   : > { %s273_s19 = scalar_lea.vmem [#allocation2], %s914_s14  ;;  %p1454_p0 = pnand %p991_p13, %p1413_p4 }
  0x21   : > { %s284_s20 = sshll.u32 %s273_s19, 4  ;;  %s270_s8 = scalar_lea.sflag [#allocation3], %s1441_s13  ;;  %s1450_s20 = int_to_ptr.vmem [resolvable:$true] %s284_s20 }
  0x22   : > { %p1060_p5 = pneg %p1454_p0 }
  0x25   : > { %s1448_s18 = scalar_lea.hbm %s1801_s0, %s947_s15  ;;  %s1063_s7 = scalar_lea.hbm %s1801_s0, 256 }
  0x26   : > { %s1058_s15 = scalar_lea.hbm %s1448_s18, 128  ;;  %p1064_p4 = scmp.lt.u32.totalorder %s1448_s18, %s1801_s0 }
  0x27   : > { %p1059_p3 = scmp.ne.s32.totalorder %s1448_s18, %s1058_s15  ;;  %p1065_p10 = scmp.lt.u32.totalorder %s1063_s7, %s1058_s15 }
  0x28   : > { %p1067_p12 = scmp.lt.u32.totalorder %s1058_s15, %s1448_s18 }
  0x29   : > { %p1061_p6 = pnand %p1060_p5, %p1059_p3  ;;  %p1066_p13 = por %p1065_p10, %p1064_p4 }
  0x2b   : > { %p1062_p7 = pneg %p1061_p6  ;;  %p1068_p1 = por %p1067_p12, %p1066_p13 }
  0x2d   : > { %p1069_p2 = pnand %p1068_p1, %p1062_p7 }
  0x2f   : > { %1072 = shalt.err (!%p1069_p2)
}
  0x30   : > { %s1073_s28 = scalar_lea.vmem %s1450_s20, 128  ;;  %s1326_s14 = smov [#allocation2]  }
  0x31   : > { %p1074_p3 = scmp.ne.s32.totalorder %s1450_s20, %s1073_s28  ;;  %s1078_s16 = sshll.u32 %s1326_s14, 4  ;;  %s1079_s16 = int_to_ptr.vmem [resolvable:$false] %s1078_s16 }
  0x32   : > { %s1080_s17 = scalar_lea.vmem %s1079_s16, 256  ;;  %p1081_p9 = scmp.lt.s32.totalorder %s1450_s20, %s1079_s16 }
  0x33   : > { %p1076_p6 = pnand %p1074_p3, %p1060_p5  ;;  %p1082_p4 = scmp.lt.s32.totalorder %s1080_s17, %s1073_s28 }
  0x35   : > { %p1077_p11 = pneg %p1076_p6  ;;  %p1083_p10 = por %p1082_p4, %p1081_p9 }
  0x37   : > { %p1084_p12 = pnand %p1083_p10, %p1077_p11 }
  0x39   : > { %1087 = shalt.err (!%p1084_p12)
}
  0x3a   : > { %971 = dma.hbm_to_vmem [thread:$0]  (!%p1454_p0), %s1448_s18, 128, %s1450_s20, %s270_s8  }
  0x3b   : > { %p1803_p1 = scmp.lt.s32.totalorder %s1324_s26, 3  ;;  %p1804_p2 = scmp.ge.s32.totalorder %s1324_s26, 1 }
  0x3c   : > { %s917_s28 = sshll.u32 %s1441_s13, 1  ;;  %s948_s7 = sshll.u32 %s1320_s25, 5 }
  0x3d   : > { %p1490_p7 = pnand %p1804_p2, %p1803_p1  ;;  %s1806_s1 = sld [smem:[#allocation23_spill]] }
  0x3e   : > { %s295_s17 = scalar_lea.vmem [#allocation5], %s917_s28  ;;  %s292_s18 = scalar_lea.sflag [#allocation6], %s1441_s13 }
  0x3f   : > { %s1805_s15 = scalar_select %p1490_p7, 1, 0 }
  0x40   : > { %s306_s0 = sshll.u32 %s295_s17, 4  ;;  %s307_s0 = int_to_ptr.vmem [resolvable:$true] %s306_s0 }
  0x43   : > { %s1499_s16 = scalar_lea.hbm %s1806_s1, %s948_s7  ;;  %s1093_s19 = scalar_lea.hbm %s1806_s1, 64 }
  0x44   : > { %s1088_s20 = scalar_lea.hbm %s1499_s16, 32  ;;  %p1094_p3 = scmp.lt.u32.totalorder %s1499_s16, %s1806_s1 }
  0x45   : > { %p1089_p9 = scmp.ne.s32.totalorder %s1499_s16, %s1088_s20  ;;  %p1095_p6 = scmp.lt.u32.totalorder %s1093_s19, %s1088_s20 }
  0x46   : > { %p1097_p10 = scmp.lt.u32.totalorder %s1088_s20, %s1499_s16 }
  0x47   : > { %p1091_p11 = pnand %p1089_p9, %p1060_p5  ;;  %p1096_p4 = por %p1095_p6, %p1094_p3 }
  0x49   : > { %p1092_p13 = pneg %p1091_p11  ;;  %p1098_p12 = por %p1097_p10, %p1096_p4 }
  0x4b   : > { %p1099_p1 = pnand %p1098_p12, %p1092_p13 }
  0x4d   : > { %1102 = shalt.err (!%p1099_p1)
}
  0x4e   : > { %s1103_s13 = scalar_lea.vmem %s307_s0, 32  ;;  %s1327_s28 = smov [#allocation5]  }
  0x4f   : > { %p1104_p2 = scmp.ne.s32.totalorder %s307_s0, %s1103_s13  ;;  %s1108_s29 = sshll.u32 %s1327_s28, 4  ;;  %s1109_s29 = int_to_ptr.vmem [resolvable:$false] %s1108_s29 }
  0x50   : > { %s1110_s17 = scalar_lea.vmem %s1109_s29, 64  ;;  %p1111_p8 = scmp.lt.s32.totalorder %s307_s0, %s1109_s29 }
  0x51   : > { %p1106_p9 = pnand %p1104_p2, %p1060_p5  ;;  %p1112_p7 = scmp.lt.s32.totalorder %s1110_s17, %s1103_s13 }
  0x53   : > { %p1107_p11 = pneg %p1106_p9  ;;  %p1113_p3 = por %p1112_p7, %p1111_p8 }
  0x55   : > { %p1114_p6 = pnand %p1113_p3, %p1107_p11 }
  0x57   : > { %1117 = shalt.err (!%p1114_p6)
}
  0x58   : > { %974 = dma.hbm_to_vmem [thread:$0]  (!%p1454_p0), %s1499_s16, 32, %s307_s0, %s292_s18  }
  0x59   : > { %p1807_p13 = scmp.ne.s32.totalorder %s1805_s15, 0 }
  0x5a   : > { %s1524_s20 = sand.u32 (!%p1807_p13), 1, %s1308_s22   ;;  %p1808_p8 = scmp.ne.s32.totalorder (!%p1807_p13), %s1797_s9, 0 }
  0x5b   : > { %315 = sbr.rel (%p1807_p13) target bundleno = 293 (0x125), region = 28  ;;  %s1527_s8 = sshll.u32 (!%p1807_p13), %s1524_s20, 3 }
  0x5c   : > { %s318_s19 = scalar_lea.sflag (!%p1807_p13), [#allocation3], %s1524_s20  ;;  %s321_s7 = scalar_lea.vmem (!%p1807_p13), [#allocation2], %s1527_s8 }
  0x62   : > { %1283 = dma.done.wait (%p1808_p8), %s318_s19, 128  }
  0x63   : > { %1285 = vsyncadd (%p1808_p8), %s318_s19, 4294967168  ;;  %s922_s0 = sshll.u32 %s1524_s20, 1  ;;  %s327_s30 = scalar_lea.sflag [#allocation6], %s1524_s20 }
  0x64   : > { %s330_s15 = scalar_lea.vmem [#allocation5], %s922_s0 }
  0x65   : > { %1287 = dma.done.wait (%p1808_p8), %s327_s30, 32  }
  0x66   : > { %1289 = vsyncadd (%p1808_p8), %s327_s30, 4294967264  ;;  %v397_v0 = vlaneseq  ;;  %s1547_s16 = scalar_lea.vmem [#allocation8], %s922_s0  ;;  %v1328_v3 = vmov 0.0   ;;  %s1552_s18 = scalar_lea.vmem [#allocation7], %s922_s0  ;;  %vm427_vm1 = vcmask 1043456   ;;  %v408_v6 = vld [vmem:[%s321_s7] sm:$0xff] }
  0x67   : > { %v409_v7 = vld [vmem:[%s330_s15] sm:$0x3]  ;;  %v425_v10 = vcombine.high %v408_v6, %v408_v6  ;;  %v428_v11 = vsel %vm427_vm1, %v408_v6, -inf  ;;  %s383_s9 = scalar_lea.vmem [#allocation13], %s1527_s8  ;;  %s1791_s14 = sand.u32 1, %s1401_s27  }
  0x68   : > { %vm1541_vm0 = vcmp.lt.s32.totalorder %v397_v0, 256  ;;  %v1545_v2 = vshrl.u32 %v397_v0, 7  ;;  %v429_v12 = vrot.slane %v428_v11, 4  ;;  %s1570_s13 = sshll.u32 %s1316_s24, 7  ;;  %s376_s28 = scalar_lea.vmem [#allocation11], %s1527_s8 }
  0x69   : > { %402 = vst.msk [vmem:[%s1547_s16] sm:$0x3] %vm1541_vm0, %v1328_v3  ;;  %401 = vst.msk [vmem:[%s1552_s18] sm:$0x3] %vm1541_vm0, %v1328_v3  ;;  %v435_v13 = vsel %vm427_vm1, %v425_v10, -inf  ;;  %s656_s29 = sshll.u32 %s376_s28, 4  ;;  %s1579_s0 = scalar_lea.hbm %s1784_s5, %s1570_s13  ;;  %s1581_s29 = int_to_ptr.vmem [resolvable:$true] %s656_s29 }
  0x6a   : > { %v412_v4 = vsub.s32 0, %v1545_v2  ;;  %v416_v5 = vsub.s32 1, %v1545_v2  ;;  %v430_v16 = vmax.f32 %v428_v11, %v429_v12  ;;  %v436_v17 = vrot.slane %v435_v13, 4  ;;  %s671_s17 = sshll.u32 %s383_s9, 4  ;;  %s1594_s19 = scalar_lea.sflag [#allocation12], %s1791_s14  ;;  %s1583_s17 = int_to_ptr.vmem [resolvable:$true] %s671_s17 }
  0x6b   : > { %s1118_s7 = scalar_lea.vmem %s1581_s29, 128  ;;  %p1811_p5 = scmp.ne.s32.totalorder %s1798_s10, 0 }
  0x6c   : > { %v413_v8 = vrot.slane %v409_v7, %v412_v4  ;;  %v417_v9 = vrot.slane %v409_v7, %v416_v5  ;;  %v431_v19 = vrot.slane %v430_v16, 2  ;;  %v437_v20 = vmax.f32 %v435_v13, %v436_v17  ;;  %p1119_p0 = scmp.ne.s32.totalorder %s1581_s29, %s1118_s7  ;;  %s1329_s1 = smov [#allocation11]  }
  0x6d   : > { %s1122_s25 = sshll.u32 %s1329_s1, 4  ;;  %s1123_s25 = int_to_ptr.vmem [resolvable:$false] %s1122_s25 }
  0x6e   : > { %vm418_vm2 = vcmp.eq.s32.totalorder %v1545_v2, %v413_v8  ;;  %vm419_vm3 = vcmp.eq.s32.totalorder %v1545_v2, %v417_v9  ;;  %v432_v21 = vmax.f32 %v430_v16, %v431_v19  ;;  %v438_v22 = vrot.slane %v437_v20, 2  ;;  %p1120_p7 = pnand %p1119_p0, %p1811_p5  ;;  %s1124_s11 = scalar_lea.vmem %s1123_s25, 256 }
  0x6f   : > { %v928_v14 = vsel %vm418_vm2, 1.0, %v1328_v3  ;;  %v929_v15 = vsel %vm419_vm3, 1.0, %v1328_v3  ;;  %p1125_p10 = scmp.lt.s32.totalorder %s1581_s29, %s1123_s25  ;;  %p1126_p12 = scmp.lt.s32.totalorder %s1124_s11, %s1118_s7 }
  0x70   : > { %v564_v18 = vcombine.low %v928_v14, %v929_v15  ;;  %v433_v23 = vrot.slane %v432_v21, 1  ;;  %v439_v24 = vmax.f32 %v437_v20, %v438_v22  ;;  %p1121_p4 = pneg %p1120_p7 }
  0x71   : > { %p1127_p1 = por %p1126_p12, %p1125_p10 }
  0x72   : > { %574 = vst [vmem:[%s383_s9] sm:$0xff] %v564_v18  ;;  %v434_v25 = vmax.f32 %v432_v21, %v433_v23  ;;  %v440_v26 = vrot.slane %v439_v24, 1  ;;  %s1589_s9 = scalar_lea.hbm %s1785_s6, %s1570_s13 }
  0x73   : > { %p1128_p2 = pnand %p1127_p1, %p1121_p4 }
  0x74   : > { %v441_v27 = vmax.f32 %v439_v24, %v440_v26 }
  0x76   : > { %v444_v28 = vcombine.low %v434_v25, %v441_v27 }
  0x78   : > { %v446_v29 = vsub.f32 %v408_v6, %v444_v28 }
  0x7a   : > { %v447_v30 = vmul.f32 1.442695, %v446_v29 }
  0x7c   : > { %1044 = vpow2.f32 %v447_v30 }
  0x86   : > { %v1045_v31 = vpop.eup %1044 }
  0x87   : > { %v450_v32 = vcombine.high %v1045_v31, %v1045_v31  ;;  %v452_v33 = vsel %vm427_vm1, %v1045_v31, 0.0 }
  0x88   : > { %v453_v34 = vrot.slane %v452_v33, 4 }
  0x89   : > { %v459_v35 = vsel %vm427_vm1, %v450_v32, 0.0 }
  0x8a   : > { %v454_v36 = vadd.f32 %v453_v34, %v452_v33  ;;  %v460_v37 = vrot.slane %v459_v35, 4 }
  0x8c   : > { %v455_v38 = vrot.slane %v454_v36, 2  ;;  %v461_v39 = vadd.f32 %v460_v37, %v459_v35 }
  0x8e   : > { %v456_v40 = vadd.f32 %v455_v38, %v454_v36  ;;  %v462_v41 = vrot.slane %v461_v39, 2 }
  0x90   : > { %v457_v42 = vrot.slane %v456_v40, 1  ;;  %v463_v43 = vadd.f32 %v462_v41, %v461_v39 }
  0x92   : > { %v458_v44 = vadd.f32 %v457_v42, %v456_v40  ;;  %v464_v45 = vrot.slane %v463_v43, 1 }
  0x94   : > { %v465_v46 = vadd.f32 %v464_v45, %v463_v43  ;;  %1046 = vlog2.f32 %v458_v44 }
  0x95   : > { %1048 = vrcp.f32 %v458_v44 }
  0x96   : > { %1050 = vlog2.f32 %v465_v46 }
  0x97   : > { %1052 = vrcp.f32 %v465_v46 }
  0x9e   : > { %v1047_v47 = vpop.eup %1046 }
  0x9f   : > { %v1049_v48 = vpop.eup %1048  ;;  %v474_v49 = vmul.f32 0.6931472, %v1047_v47 }
  0xa0   : > { %v1051_v50 = vpop.eup %1050 }
  0xa1   : > { %v1053_v51 = vpop.eup %1052  ;;  %v476_v52 = vmul.f32 0.6931472, %v1051_v50 }
  0xa2   : > { %v470_v53 = vcombine.low %v1049_v48, %v1053_v51 }
  0xa3   : > { %v479_v54 = vcombine.low %v474_v49, %v476_v52 }
  0xa4   : > { %v472_v55 = vmul.f32 %v1045_v31, %v470_v53 }
  0xa5   : > { %v481_v56 = vsub.f32 %v446_v29, %v479_v54 }
  0xa6   : > { %v566_v57 = vmul.f32 %v564_v18, %v472_v55  ;;  %571 = vst [vmem:[%s376_s28] sm:$0xff] %v472_v55 }
  0xa7   : > { %v483_v58 = vcombine.high %v481_v56, %v481_v56  ;;  %v485_v59 = vmul.f32 %v928_v14, %v481_v56 }
  0xa9   : > { %v486_v60 = vmul.f32 %v929_v15, %v483_v58  ;;  %v487_v61 = vsel %vm427_vm1, %v485_v59, 0.0 }
  0xaa   : > { %1131 = shalt.err (!%p1128_p2)
}
  0xab   : > { %s1132_s28 = scalar_lea.hbm %s1579_s0, 128  ;;  %s1136_s1 = scalar_lea.hbm %s1784_s5, 256 }
  0xac   : > { %p1133_p9 = scmp.ne.s32.totalorder %s1579_s0, %s1132_s28  ;;  %p1137_p6 = scmp.lt.u32.totalorder %s1579_s0, %s1784_s5 }
  0xad   : > { %p1138_p13 = scmp.lt.u32.totalorder %s1136_s1, %s1132_s28  ;;  %p1140_p0 = scmp.lt.u32.totalorder %s1132_s28, %s1579_s0 }
  0xae   : > { %p1134_p11 = pnand %p1133_p9, %p1811_p5 }
  0xaf   : > { %p1139_p8 = por %p1138_p13, %p1137_p6 }
  0xb0   : > { %p1135_p3 = pneg %p1134_p11 }
  0xb1   : > { %p1141_p7 = por %p1140_p0, %p1139_p8 }
  0xb3   : > { %p1142_p4 = pnand %p1141_p7, %p1135_p3 }
  0xb5   : > { %1145 = shalt.err (!%p1142_p4)
}
  0xb6   : > { %961 = dma.vmem_to_hbm [thread:$0]  (%p1811_p5), %s1581_s29, 128, %s1579_s0, %s1594_s19   ;;  %v488_v62 = vrot.slane %v487_v61, 4 }
  0xb7   : > { %s369_s11 = scalar_lea.vmem [#allocation10], %s1527_s8  ;;  %s1146_s14 = scalar_lea.vmem %s1583_s17, 128 }
  0xb8   : > { %568 = vst [vmem:[%s369_s11] sm:$0xff] %v566_v57  ;;  %p1147_p10 = scmp.ne.s32.totalorder %s1583_s17, %s1146_s14  ;;  %s1330_s7 = smov [#allocation13]  }
  0xb9   : > { %s1150_s28 = sshll.u32 %s1330_s7, 4  ;;  %s1151_s28 = int_to_ptr.vmem [resolvable:$false] %s1150_s28 }
  0xba   : > { %p1148_p12 = pnand %p1147_p10, %p1811_p5  ;;  %s1152_s30 = scalar_lea.vmem %s1151_s28, 256 }
  0xbb   : > { %p1153_p2 = scmp.lt.s32.totalorder %s1583_s17, %s1151_s28  ;;  %p1154_p9 = scmp.lt.s32.totalorder %s1152_s30, %s1146_s14 }
  0xbc   : > { %p1149_p1 = pneg %p1148_p12 }
  0xbd   : > { %p1155_p11 = por %p1154_p9, %p1153_p2 }
  0xbf   : > { %p1156_p3 = pnand %p1155_p11, %p1149_p1 }
  0xc1   : > { %1159 = shalt.err (!%p1156_p3)
}
  0xc2   : > { %s1160_s29 = scalar_lea.hbm %s1589_s9, 128  ;;  %s1164_s1 = scalar_lea.hbm %s1785_s6, 256 }
  0xc3   : > { %p1161_p6 = scmp.ne.s32.totalorder %s1589_s9, %s1160_s29  ;;  %p1165_p0 = scmp.lt.u32.totalorder %s1589_s9, %s1785_s6 }
  0xc4   : > { %p1166_p7 = scmp.lt.u32.totalorder %s1164_s1, %s1160_s29  ;;  %p1168_p10 = scmp.lt.u32.totalorder %s1160_s29, %s1589_s9 }
  0xc5   : > { %p1162_p13 = pnand %p1161_p6, %p1811_p5 }
  0xc6   : > { %p1167_p4 = por %p1166_p7, %p1165_p0 }
  0xc7   : > { %p1163_p8 = pneg %p1162_p13 }
  0xc8   : > { %p1169_p12 = por %p1168_p10, %p1167_p4 }
  0xca   : > { %p1170_p1 = pnand %p1169_p12, %p1163_p8 }
  0xcc   : > { %1173 = shalt.err (!%p1170_p1)
}
  0xcd   : > { %962 = dma.vmem_to_hbm [thread:$0]  (%p1811_p5), %s1583_s17, 128, %s1589_s9, %s1594_s19   ;;  %v494_v63 = vsel %vm427_vm1, %v486_v60, 0.0  ;;  %v489_v0 = vadd.f32 %v488_v62, %v487_v61  ;;  %v1331_v8 = vmov 1966171168   ;;  %v515_v25 = vld [vmem:[%s1552_s18] sm:$0x3] }
  0xce   : > { %v495_v3 = vrot.slane %v494_v63, 4  ;;  %v520_v9 = vunpack.c.l.s4 %v1331_v8  ;;  %s949_s17 = sshll.u32 %s1316_s24, 5  ;;  %s611_s9 = sshll.u32 %s1552_s18, 4  ;;  %s1655_s9 = int_to_ptr.vmem [resolvable:$true] %s611_s9 }
  0xcf   : > { %v490_v4 = vrot.slane %v489_v0, 2  ;;  %s1653_s28 = scalar_lea.hbm %s1781_s2, %s949_s17  ;;  %s576_s30 = scalar_lea.sflag [#allocation4], %s1524_s20 }
  0xd0   : > { %v496_v5 = vadd.f32 %v495_v3, %v494_v63  ;;  %v521_v14 = vunpack.c.0.s8 %v520_v9  ;;  %s1174_s29 = scalar_lea.vmem %s1655_s9, 32  ;;  %s1332_s0 = smov [#allocation7]  }
  0xd1   : > { %v491_v6 = vadd.f32 %v490_v4, %v489_v0  ;;  %p1175_p2 = scmp.ne.s32.totalorder %s1655_s9, %s1174_s29  ;;  %s1178_s15 = sshll.u32 %s1332_s0, 4  ;;  %s1179_s15 = int_to_ptr.vmem [resolvable:$false] %s1178_s15 }
  0xd2   : > { %v497_v7 = vrot.slane %v496_v5, 2  ;;  %v524_v19 = vsub.s32 %v521_v14, %v1545_v2  ;;  %s1180_s1 = scalar_lea.vmem %s1179_s15, 64  ;;  %p1181_p3 = scmp.lt.s32.totalorder %s1655_s9, %s1179_s15 }
  0xd3   : > { %v492_v10 = vrot.slane %v491_v6, 1  ;;  %p1176_p9 = pnand %p1175_p2, %p1811_p5  ;;  %p1182_p6 = scmp.lt.s32.totalorder %s1180_s1, %s1174_s29 }
  0xd4   : > { %v498_v11 = vadd.f32 %v497_v7, %v496_v5 }
  0xd5   : > { %v493_v12 = vadd.f32 %v492_v10, %v491_v6  ;;  %p1177_p11 = pneg %p1176_p9  ;;  %p1183_p13 = por %p1182_p6, %p1181_p3 }
  0xd6   : > { %v499_v13 = vrot.slane %v498_v11, 1 }
  0xd7   : > { %v501_v16 = vsub.f32 0.0, %v493_v12  ;;  %p1184_p8 = pnand %p1183_p13, %p1177_p11 }
  0xd8   : > { %v500_v15 = vadd.f32 %v499_v13, %v498_v11 }
  0xd9   : > { %v503_v18 = vsub.f32 0.0, %v501_v16 }
  0xda   : > { %v502_v17 = vsub.f32 0.0, %v500_v15 }
  0xdb   : > { %v505_v21 = vmul.f32 1.442695, %v503_v18 }
  0xdc   : > { %v504_v20 = vsub.f32 0.0, %v502_v17  ;;  %v518_v22 = vcombine.low %v501_v16, %v502_v17 }
  0xdd   : > { %1054 = vpow2.f32 %v505_v21 }
  0xde   : > { %v507_v23 = vmul.f32 1.442695, %v504_v20  ;;  %v525_v24 = vrot.slane %v518_v22, %v524_v19 }
  0xe0   : > { %1056 = vpow2.f32 %v507_v23  ;;  %v532_v26 = vrot.slane %v525_v24, %v524_v19 }
  0xe2   : > { %v534_v27 = vadd.f32 %v532_v26, %v515_v25 }
  0xe4   : > { %539 = vst.msk [vmem:[%s1552_s18] sm:$0x3] %vm1541_vm0, %v534_v27 }
  0xe5   : > { %1187 = shalt.err (!%p1184_p8)
}
  0xe6   : > { %s1188_s20 = scalar_lea.hbm %s1653_s28, 32  ;;  %s1192_s7 = scalar_lea.hbm %s1781_s2, 64 }
  0xe7   : > { %p1189_p0 = scmp.ne.s32.totalorder %s1653_s28, %s1188_s20  ;;  %p1193_p10 = scmp.lt.u32.totalorder %s1653_s28, %s1781_s2 }
  0xe8   : > { %p1194_p12 = scmp.lt.u32.totalorder %s1192_s7, %s1188_s20  ;;  %p1196_p2 = scmp.lt.u32.totalorder %s1188_s20, %s1653_s28 }
  0xe9   : > { %p1190_p7 = pnand %p1189_p0, %p1811_p5 }
  0xea   : > { %p1195_p1 = por %p1194_p12, %p1193_p10 }
  0xeb   : > { %p1191_p4 = pneg %p1190_p7 }
  0xec   : > { %p1197_p9 = por %p1196_p2, %p1195_p1 }
  0xee   : > { %p1198_p11 = pnand %p1197_p9, %p1191_p4 }
  0xf0   : > { %1201 = shalt.err (!%p1198_p11)
}
  0xf1   : > { %958 = dma.vmem_to_hbm [thread:$0]  (%p1811_p5), %s1655_s9, 32, %s1653_s28, %s576_s30   ;;  %v1055_v2 = vpop.eup %1054  ;;  %v540_v37 = vld [vmem:[%s1547_s16] sm:$0x3] }
  0xf2   : > { %v509_v28 = vsub.f32 1.0, %v1055_v2  ;;  %v1057_v29 = vpop.eup %1056  ;;  %s626_s29 = sshll.u32 %s1547_s16, 4  ;;  %s641_s9 = sshll.u32 %s369_s11, 4  ;;  %s1693_s29 = int_to_ptr.vmem [resolvable:$true] %s626_s29  ;;  %s1695_s9 = int_to_ptr.vmem [resolvable:$true] %s641_s9 }
  0xf3   : > { %v510_v30 = vsub.f32 1.0, %v1057_v29  ;;  %s1691_s0 = scalar_lea.hbm %s1782_s3, %s949_s17  ;;  %s1701_s20 = scalar_lea.hbm %s1783_s4, %s1570_s13 }
  0xf4   : > { %v511_v31 = vmul.f32 %v509_v28, %v509_v28  ;;  %s1812_s24 = sand.u32 1, %s1401_s27   ;;  %s1202_s11 = scalar_lea.vmem %s1693_s29, 32 }
  0xf5   : > { %v512_v32 = vmul.f32 %v510_v30, %v510_v30  ;;  %s1708_s8 = scalar_lea.sflag [#allocation9], %s1812_s24  ;;  %p1203_p3 = scmp.ne.s32.totalorder %s1693_s29, %s1202_s11 }
  0xf6   : > { %v513_v33 = vmul.f32 %v511_v31, %v501_v16  ;;  %s1333_s17 = smov [#allocation8]  }
  0xf7   : > { %v514_v34 = vmul.f32 %v512_v32, %v502_v17  ;;  %p1204_p6 = pnand %p1203_p3, %p1811_p5  ;;  %s1206_s18 = sshll.u32 %s1333_s17, 4  ;;  %s1207_s18 = int_to_ptr.vmem [resolvable:$false] %s1206_s18 }
  0xf8   : > { %s1208_s25 = scalar_lea.vmem %s1207_s18, 64  ;;  %p1209_p8 = scmp.lt.s32.totalorder %s1693_s29, %s1207_s18 }
  0xf9   : > { %v543_v35 = vcombine.low %v513_v33, %v514_v34  ;;  %p1205_p13 = pneg %p1204_p6  ;;  %p1210_p0 = scmp.lt.s32.totalorder %s1208_s25, %s1202_s11 }
  0xfb   : > { %v550_v36 = vrot.slane %v543_v35, %v524_v19  ;;  %p1211_p7 = por %p1210_p0, %p1209_p8 }
  0xfd   : > { %v557_v38 = vrot.slane %v550_v36, %v524_v19  ;;  %p1212_p4 = pnand %p1211_p7, %p1205_p13 }
  0xff   : > { %v559_v39 = vadd.f32 %v557_v38, %v540_v37 }
 0x101   : > { %560 = vst.msk [vmem:[%s1547_s16] sm:$0x3] %vm1541_vm0, %v559_v39 }
 0x102   : > { %1215 = shalt.err (!%p1212_p4)
}
 0x103   : > { %s1216_s27 = scalar_lea.hbm %s1691_s0, 32  ;;  %s1220_s7 = scalar_lea.hbm %s1782_s3, 64 }
 0x104   : > { %p1217_p10 = scmp.ne.s32.totalorder %s1691_s0, %s1216_s27  ;;  %p1221_p2 = scmp.lt.u32.totalorder %s1691_s0, %s1782_s3 }
 0x105   : > { %p1222_p9 = scmp.lt.u32.totalorder %s1220_s7, %s1216_s27  ;;  %p1224_p3 = scmp.lt.u32.totalorder %s1216_s27, %s1691_s0 }
 0x106   : > { %p1218_p12 = pnand %p1217_p10, %p1811_p5 }
 0x107   : > { %p1223_p11 = por %p1222_p9, %p1221_p2 }
 0x108   : > { %p1219_p1 = pneg %p1218_p12 }
 0x109   : > { %p1225_p6 = por %p1224_p3, %p1223_p11 }
 0x10b   : > { %p1226_p13 = pnand %p1225_p6, %p1219_p1 }
 0x10d   : > { %1229 = shalt.err (!%p1226_p13)
}
 0x10e   : > { %959 = dma.vmem_to_hbm [thread:$0]  (%p1811_p5), %s1693_s29, 32, %s1691_s0, %s1708_s8  }
 0x10f   : > { %s1230_s28 = scalar_lea.vmem %s1695_s9, 128  ;;  %s1334_s30 = smov [#allocation10]  }
 0x110   : > { %p1231_p8 = scmp.ne.s32.totalorder %s1695_s9, %s1230_s28  ;;  %s1234_s15 = sshll.u32 %s1334_s30, 4  ;;  %s1235_s15 = int_to_ptr.vmem [resolvable:$false] %s1234_s15 }
 0x111   : > { %s1236_s1 = scalar_lea.vmem %s1235_s15, 256  ;;  %p1237_p4 = scmp.lt.s32.totalorder %s1695_s9, %s1235_s15 }
 0x112   : > { %p1232_p0 = pnand %p1231_p8, %p1811_p5  ;;  %p1238_p10 = scmp.lt.s32.totalorder %s1236_s1, %s1230_s28 }
 0x114   : > { %p1233_p7 = pneg %p1232_p0  ;;  %p1239_p12 = por %p1238_p10, %p1237_p4 }
 0x116   : > { %p1240_p1 = pnand %p1239_p12, %p1233_p7 }
 0x118   : > { %1243 = shalt.err (!%p1240_p1)
}
 0x119   : > { %s1244_s29 = scalar_lea.hbm %s1701_s20, 128  ;;  %s1248_s11 = scalar_lea.hbm %s1783_s4, 256 }
 0x11a   : > { %p1245_p2 = scmp.ne.s32.totalorder %s1701_s20, %s1244_s29  ;;  %p1249_p3 = scmp.lt.u32.totalorder %s1701_s20, %s1783_s4 }
 0x11b   : > { %p1250_p6 = scmp.lt.u32.totalorder %s1248_s11, %s1244_s29  ;;  %p1252_p8 = scmp.lt.u32.totalorder %s1244_s29, %s1701_s20 }
 0x11c   : > { %p1246_p9 = pnand %p1245_p2, %p1811_p5 }
 0x11d   : > { %p1251_p13 = por %p1250_p6, %p1249_p3 }
 0x11e   : > { %p1247_p11 = pneg %p1246_p9 }
 0x11f   : > { %p1253_p0 = por %p1252_p8, %p1251_p13 }
 0x121   : > { %p1254_p7 = pnand %p1253_p0, %p1247_p11 }
 0x123   : > { %1257 = shalt.err (!%p1254_p7)
}
 0x124   : > { %960 = dma.vmem_to_hbm [thread:$0]  (%p1811_p5), %s1695_s9, 128, %s1701_s20, %s1708_s8  }
 0x125 PF: > { %s683_s25 = sand.u32 1, %s1304_s21   ;;  %p1813_p4 = scmp.ne.s32.totalorder %s1800_s12, 0 }
 0x126   : > { %p1814_p10 = scmp.ge.s32.totalorder %s1324_s26, 2  ;;  %s684_s27 = scalar_lea.sflag [#allocation4], %s683_s25 }
 0x128   : > { %p976_p12 = pnand %p1814_p10, %p1813_p4 }
 0x12a   : > { %1291 = dma.done.wait (!%p976_p12), %s684_s27, 32  }
 0x12b   : > { %1293 = vsyncadd (!%p976_p12), %s684_s27, 4294967264  ;;  %s1815_s16 = sadd.s32 4294967294, %s1324_s26  }
 0x12c   : > { %s692_s13 = sand.u32 1, %s1815_s16  }
 0x12d   : > { %s693_s7 = scalar_lea.sflag [#allocation9], %s692_s13 }
 0x12e   : > { %1295 = dma.done.wait (!%p976_p12), %s693_s7, 160  }
 0x12f   : > { %1297 = vsyncadd (!%p976_p12), %s693_s7, 4294967136  ;;  %s711_s10 = scalar_lea.sflag [#allocation12], %s692_s13 }
 0x130   : > { %1299 = dma.done.wait (!%p976_p12), %s711_s10, 256  }
 0x131   : > { %1301 = vsyncadd (!%p976_p12), %s711_s10, 4294967040  ;;  %s32_s26 = sadd.s32 1, %s1324_s26   ;;  %s1816_s12 = sld [smem:[#allocation21_spill]] }
 0x132   : > { %p29_p5 = scmp.ge.s32.totalorder %s32_s26, 4   ;;  %s1817_s24 = sld [smem:[#allocation19_spill]] }
 0x133   : > { %s1818_s25 = sld [smem:[#allocation20_spill]]  ;;  %s1819_s21 = smov %s1308_s22 }
 0x134   : > { %s1820_s22 = smov %s1312_s23  ;;  %31 = sbr.rel (!%p29_p5) target bundleno = 15 (0xf), region = 154 }
 0x137   : > { %s1821_s23 = smov %s1816_s12 }
 0x13b   :  { %725 = vsyncpa [#allocation3], 1 }
 0x13c   :  { %727 = vsyncpa [#allocation3 + $0x1], 1 }
 0x13d   :  { %728 = vsyncpa [#allocation6], 1 }
 0x13e   :  { %730 = vsyncpa [#allocation6 + $0x1], 1 }
 0x13f   :  { %731 = vsyncpa [#allocation4], 1 }
 0x140   :  { %733 = vsyncpa [#allocation4 + $0x1], 1 }
 0x141   :  { %734 = vsyncpa [#allocation9], 1 }
 0x142   :  { %736 = vsyncpa [#allocation9 + $0x1], 1 }
 0x143   :  { %737 = vsyncpa [#allocation12], 1 }
 0x144   :  { %739 = vsyncpa [#allocation12 + $0x1], 1 }

</bundles_post_ra>
